<compile_context>
chip_gen: v7x
topology: tpu7x:2x2x1
jax: 0.10.0
libtpu: 0.0.40
codegen_flags: <defaults>
</compile_context>

<pallas_src>
from functools import partial

import jax
import jax.numpy as jnp
from jax.experimental import pallas as pl
from jax.experimental.pallas import tpu as pltpu


def qnetwork_kernel(x_ref, w1_ref, b1_ref, w2_ref, b2_ref, w3_ref, b3_ref, o_ref):
    # fc1 + relu (bf16 MXU operands, f32 accumulation, f32 elementwise)
    x = x_ref[...].astype(jnp.bfloat16)
    h1 = jnp.dot(x, w1_ref[...], preferred_element_type=jnp.float32)
    h1 = jnp.maximum(h1 + b1_ref[...], 0.0)
    # fc2 + relu
    h2 = jnp.dot(h1.astype(jnp.bfloat16), w2_ref[...],
                 preferred_element_type=jnp.float32)
    h2 = jnp.maximum(h2 + b2_ref[...], 0.0)
    # fc3 (no activation)
    h3 = jnp.dot(h2.astype(jnp.bfloat16), w3_ref[...],
                 preferred_element_type=jnp.float32)
    o_ref[...] = (h3 + b3_ref[...]).astype(o_ref.dtype)


def _round_up(n, m):
    return (n + m - 1) // m * m


@partial(jax.jit, static_argnames=("tb",))
def qnetwork_forward(x, params, *, tb=256):
    """x: (B, state_size) f32; params: (in,out) weights and (1,out) biases (f32).

    Returns (B, action_size) f32. Pads the batch to a multiple of the batch
    tile (only when needed) and streams batch tiles over a 1-D grid while the
    weights stay resident in VMEM.
    """
    w1, b1, w2, b2, w3, b3 = (params["w1"], params["b1"], params["w2"],
                              params["b2"], params["w3"], params["b3"])
    B, S = x.shape
    H1 = w1.shape[1]
    H2 = w2.shape[1]
    A = w3.shape[1]

    # Batch tile: at least 8 (sublane multiple), at most `tb` (256 fills the
    # v6e/v7x MXU M dimension; still fine on v5e's 128x128 MXU).
    TB = min(tb, _round_up(B, 8))
    Bp = _round_up(B, TB)
    grid = (Bp // TB,)

    x_in = x
    if Bp != B:
        x_in = jnp.pad(x_in, ((0, Bp - B), (0, 0)))

    # bf16 weight operands for the MXU (tiny, one-time cast); biases stay f32
    # for the f32 bias-add/ReLU path.
    w1_bf, w2_bf, w3_bf = (w.astype(jnp.bfloat16) for w in (w1, w2, w3))

    const2d = lambda a: pl.BlockSpec(a.shape, lambda i: (0, 0))

    flops = 2 * Bp * (S * H1 + H1 * H2 + H2 * A)
    bytes_accessed = (
        Bp * S * 4                                   # x (f32)
        + (S * H1 + H1 * H2 + H2 * A) * 2            # weights (bf16), loaded once
        + (H1 + H2 + A) * 4                          # biases (f32)
        + Bp * A * 4                                 # output (f32)
    )

    out = pl.pallas_call(
        qnetwork_kernel,
        out_shape=jax.ShapeDtypeStruct((Bp, A), x.dtype),
        grid=grid,
        in_specs=[
            pl.BlockSpec((TB, S), lambda i: (i, 0)),  # x streams per batch tile
            const2d(w1_bf), const2d(b1),              # weights/biases VMEM-resident
            const2d(w2_bf), const2d(b2),
            const2d(w3_bf), const2d(b3),
        ],
        out_specs=pl.BlockSpec((TB, A), lambda i: (i, 0)),
        compiler_params=pltpu.CompilerParams(
            dimension_semantics=("parallel",)),       # v7x: shard batch tiles across TCs
        cost_estimate=pl.CostEstimate(
            flops=flops, transcendentals=0, bytes_accessed=bytes_accessed),
    )(x_in, w1_bf, b1, w2_bf, b2, w3_bf, b3)

    return out[:B]


def init_params(key, state_size, action_size, hidden=64):
    """Deterministic init mimicking PyTorch Linear's U(-1/sqrt(in), 1/sqrt(in))."""
    ks = jax.random.split(key, 6)

    def linear(kw, kb, fan_in, fan_out):
        bound = 1.0 / jnp.sqrt(fan_in)
        w = jax.random.uniform(kw, (fan_in, fan_out), jnp.float32, -bound, bound)
        b = jax.random.uniform(kb, (1, fan_out), jnp.float32, -bound, bound)
        return w, b

    w1, b1 = linear(ks[0], ks[1], state_size, hidden)
    w2, b2 = linear(ks[2], ks[3], hidden, hidden)
    w3, b3 = linear(ks[4], ks[5], hidden, action_size)
    return {"w1": w1, "b1": b1, "w2": w2, "b2": b2, "w3": w3, "b3": b3}


def _reference(x, params):
    # Reference in plain JAX using the same bf16 quantization of x/weights
    # (accumulation in f32), matching the kernel's numerics.
    q = lambda a: a.astype(jnp.bfloat16).astype(jnp.float32)
    h = jnp.maximum(q(x) @ q(params["w1"]) + params["b1"], 0.0)
    h = jnp.maximum(q(h) @ q(params["w2"]) + params["b2"], 0.0)
    return q(h) @ q(params["w3"]) + params["b3"]


if __name__ == "__main__":
    key = jax.random.PRNGKey(0)
    k_params, k_x1, k_x2 = jax.random.split(key, 3)

    state_size, action_size = 16, 8
    params = init_params(k_params, state_size, action_size)

    # Small batch (single grid tile).
    x_small = jax.random.normal(k_x1, (8, state_size), jnp.float32)
    out_small = qnetwork_forward(x_small, params)
    jax.block_until_ready(out_small)
    assert out_small.shape == (8, action_size)
    assert jnp.allclose(out_small, _reference(x_small, params), atol=2e-2), \
        "mismatch vs reference (small batch)"

    # Larger batch exercising the batch grid + padding path (320 -> 3 tiles of 128).
    x_big = jax.random.normal(k_x2, (320, state_size), jnp.float32)
    out_big = qnetwork_forward(x_big, params, tb=128)
    jax.block_until_ready(out_big)
    assert out_big.shape == (320, action_size)
    assert jnp.allclose(out_big, _reference(x_big, params), atol=2e-2), \
        "mismatch vs reference (batched grid)"

    print("KERNEL_OK")
</pallas_src>

<mosaic_0001>
module attributes {stable_mosaic.version = 11 : i64} {
  func.func @qnetwork_kernel(%arg0: i32, %arg1: memref<8x16xf32, #tpu.memory_space<vmem>>, %arg2: memref<16x64xbf16, #tpu.memory_space<vmem>>, %arg3: memref<1x64xf32, #tpu.memory_space<vmem>>, %arg4: memref<64x64xbf16, #tpu.memory_space<vmem>>, %arg5: memref<1x64xf32, #tpu.memory_space<vmem>>, %arg6: memref<64x8xbf16, #tpu.memory_space<vmem>>, %arg7: memref<1x8xf32, #tpu.memory_space<vmem>>, %arg8: memref<8x8xf32, #tpu.memory_space<vmem>>) attributes {dimension_semantics = [#tpu.dimension_semantics<parallel>], iteration_bounds = array<i64: 1>, scalar_prefetch = 0 : i64, scratch_operands = 0 : i64, tpu.core_type = #tpu.core_type<tc>, window_params = [{transform_indices = @transform_0, window_bounds = array<i64: 8, 16>}, {pipeline_mode = #tpu.pipeline_mode<synchronous>, transform_indices = @transform_1, window_bounds = array<i64: 16, 64>}, {pipeline_mode = #tpu.pipeline_mode<synchronous>, transform_indices = @transform_2, window_bounds = array<i64: 1, 64>}, {pipeline_mode = #tpu.pipeline_mode<synchronous>, transform_indices = @transform_3, window_bounds = array<i64: 64, 64>}, {pipeline_mode = #tpu.pipeline_mode<synchronous>, transform_indices = @transform_4, window_bounds = array<i64: 1, 64>}, {pipeline_mode = #tpu.pipeline_mode<synchronous>, transform_indices = @transform_5, window_bounds = array<i64: 64, 8>}, {pipeline_mode = #tpu.pipeline_mode<synchronous>, transform_indices = @transform_6, window_bounds = array<i64: 1, 8>}, {transform_indices = @transform_7, window_bounds = array<i64: 8, 8>}]} {
    %c0 = arith.constant 0 : index
    %c0_0 = arith.constant 0 : index
    %0 = vector.load %arg1[%c0, %c0_0] : memref<8x16xf32, #tpu.memory_space<vmem>>, vector<8x16xf32>
    %1 = arith.truncf %0 : vector<8x16xf32> to vector<8x16xbf16>
    %c0_1 = arith.constant 0 : index
    %c0_2 = arith.constant 0 : index
    %2 = vector.load %arg2[%c0_1, %c0_2] : memref<16x64xbf16, #tpu.memory_space<vmem>>, vector<16x64xbf16>
    %cst = arith.constant dense<0.000000e+00> : vector<8x64xf32>
    %3 = tpu.matmul %1, %2, %cst {dimension_numbers = #tpu.dot_dimension_numbers<[1], [0], [0], [1], [0, 0, 1, 1], [], []>} : vector<8x16xbf16>, vector<16x64xbf16>, vector<8x64xf32> -> vector<8x64xf32>
    %c0_3 = arith.constant 0 : index
    %c0_4 = arith.constant 0 : index
    %4 = vector.load %arg3[%c0_3, %c0_4] : memref<1x64xf32, #tpu.memory_space<vmem>>, vector<1x64xf32>
    %5 = vector.broadcast %4 : vector<1x64xf32> to vector<8x64xf32>
    %6 = arith.addf %3, %5 : vector<8x64xf32>
    %cst_5 = arith.constant 0.000000e+00 : f32
    %7 = vector.broadcast %cst_5 : f32 to vector<8x64xf32>
    %8 = arith.maximumf %6, %7 : vector<8x64xf32>
    %9 = arith.truncf %8 : vector<8x64xf32> to vector<8x64xbf16>
    %c0_6 = arith.constant 0 : index
    %c0_7 = arith.constant 0 : index
    %10 = vector.load %arg4[%c0_6, %c0_7] : memref<64x64xbf16, #tpu.memory_space<vmem>>, vector<64x64xbf16>
    %cst_8 = arith.constant dense<0.000000e+00> : vector<8x64xf32>
    %11 = tpu.matmul %9, %10, %cst_8 {dimension_numbers = #tpu.dot_dimension_numbers<[1], [0], [0], [1], [0, 0, 1, 1], [], []>} : vector<8x64xbf16>, vector<64x64xbf16>, vector<8x64xf32> -> vector<8x64xf32>
    %c0_9 = arith.constant 0 : index
    %c0_10 = arith.constant 0 : index
    %12 = vector.load %arg5[%c0_9, %c0_10] : memref<1x64xf32, #tpu.memory_space<vmem>>, vector<1x64xf32>
    %13 = vector.broadcast %12 : vector<1x64xf32> to vector<8x64xf32>
    %14 = arith.addf %11, %13 : vector<8x64xf32>
    %cst_11 = arith.constant 0.000000e+00 : f32
    %15 = vector.broadcast %cst_11 : f32 to vector<8x64xf32>
    %16 = arith.maximumf %14, %15 : vector<8x64xf32>
    %17 = arith.truncf %16 : vector<8x64xf32> to vector<8x64xbf16>
    %c0_12 = arith.constant 0 : index
    %c0_13 = arith.constant 0 : index
    %18 = vector.load %arg6[%c0_12, %c0_13] : memref<64x8xbf16, #tpu.memory_space<vmem>>, vector<64x8xbf16>
    %cst_14 = arith.constant dense<0.000000e+00> : vector<8x8xf32>
    %19 = tpu.matmul %17, %18, %cst_14 {dimension_numbers = #tpu.dot_dimension_numbers<[1], [0], [0], [1], [0, 0, 1, 1], [], []>} : vector<8x64xbf16>, vector<64x8xbf16>, vector<8x8xf32> -> vector<8x8xf32>
    %c0_15 = arith.constant 0 : index
    %c0_16 = arith.constant 0 : index
    %20 = vector.load %arg7[%c0_15, %c0_16] : memref<1x8xf32, #tpu.memory_space<vmem>>, vector<1x8xf32>
    %21 = vector.broadcast %20 : vector<1x8xf32> to vector<8x8xf32>
    %22 = arith.addf %19, %21 : vector<8x8xf32>
    %c0_17 = arith.constant 0 : index
    %c0_18 = arith.constant 0 : index
    %23 = vector.load %arg8[%c0_17, %c0_18] : memref<8x8xf32, #tpu.memory_space<vmem>>, vector<8x8xf32>
    tpu.vector_store %arg8[%c0_17, %c0_18], %22 {strides = array<i32>} : memref<8x8xf32, #tpu.memory_space<vmem>>, vector<8x8xf32>,
    return
  }
  func.func @transform_0(%arg0: i32) -> (i32, i32) {
    %c0_i32 = arith.constant 0 : i32
    %c0_i32_0 = arith.constant 0 : i32
    return %arg0, %c0_i32 : i32, i32
  }
  func.func @transform_1(%arg0: i32) -> (i32, i32) {
    %c0_i32 = arith.constant 0 : i32
    %c0_i32_0 = arith.constant 0 : i32
    %c0_i32_1 = arith.constant 0 : i32
    return %c0_i32, %c0_i32_0 : i32, i32
  }
  func.func @transform_2(%arg0: i32) -> (i32, i32) {
    %c0_i32 = arith.constant 0 : i32
    %c0_i32_0 = arith.constant 0 : i32
    %c0_i32_1 = arith.constant 0 : i32
    return %c0_i32, %c0_i32_0 : i32, i32
  }
  func.func @transform_3(%arg0: i32) -> (i32, i32) {
    %c0_i32 = arith.constant 0 : i32
    %c0_i32_0 = arith.constant 0 : i32
    %c0_i32_1 = arith.constant 0 : i32
    return %c0_i32, %c0_i32_0 : i32, i32
  }
  func.func @transform_4(%arg0: i32) -> (i32, i32) {
    %c0_i32 = arith.constant 0 : i32
    %c0_i32_0 = arith.constant 0 : i32
    %c0_i32_1 = arith.constant 0 : i32
    return %c0_i32, %c0_i32_0 : i32, i32
  }
  func.func @transform_5(%arg0: i32) -> (i32, i32) {
    %c0_i32 = arith.constant 0 : i32
    %c0_i32_0 = arith.constant 0 : i32
    %c0_i32_1 = arith.constant 0 : i32
    return %c0_i32, %c0_i32_0 : i32, i32
  }
  func.func @transform_6(%arg0: i32) -> (i32, i32) {
    %c0_i32 = arith.constant 0 : i32
    %c0_i32_0 = arith.constant 0 : i32
    %c0_i32_1 = arith.constant 0 : i32
    return %c0_i32, %c0_i32_0 : i32, i32
  }
  func.func @transform_7(%arg0: i32) -> (i32, i32) {
    %c0_i32 = arith.constant 0 : i32
    %c0_i32_0 = arith.constant 0 : i32
    return %arg0, %c0_i32 : i32, i32
  }
}

</mosaic_0001>

<bundles_post_ra>
// kernel: qnetwork_forward.1
= control target key start
LH: loop header
LB: loop body
LE: loop exit
PB: predicated region body
PF: predicated region fallthrough
CT: control target
= control target key end

     0   :  { %v367_v1 = vmov 0.0   ;;  %vm45_vm0 = vcmask 130048   ;;  %vm368_vm1 = vmmov 0   ;;  %s463_s0 = inlined_call_operand.vmem [shape: f32[8,16], index: 0, kind: input, shape index: {}]   ;;  %s464_s1 = inlined_call_operand.vmem [shape: bf16[16,64], index: 1, kind: input, shape index: {}]   ;;  %s465_s2 = inlined_call_operand.vmem [shape: f32[1,64], index: 2, kind: input, shape index: {}]   ;;  %s466_s3 = inlined_call_operand.vmem [shape: bf16[64,64], index: 3, kind: input, shape index: {}]   ;;  %s467_s4 = inlined_call_operand.vmem [shape: f32[1,64], index: 4, kind: input, shape index: {}]   ;;  %s468_s5 = inlined_call_operand.vmem [shape: bf16[64,8], index: 5, kind: input, shape index: {}]   ;;  %s469_s6 = inlined_call_operand.vmem [shape: f32[1,8], index: 6, kind: input, shape index: {}]   ;;  %s470_s7 = inlined_call_operand.hbm [shape: f32[8,8], index: 7, kind: output, shape index: {}]  }
   0x1   :  { %v334_v0 = vld [vmem:[%s464_s1] sm:$0xff]   ;;  %301 = vmatprep.subr.bf16.mxu0 %v367_v1  ;;  %307 = vmatprep.subr.bf16.mxu1 %v367_v1  ;;  %v336_v5 = vld [vmem:[%s466_s3 + $0x8] sm:$0xff]  }
   0x2   :  { %v28_v2 = vld [vmem:[%s463_s0] sm:$0xff]  ;;  %302 = vmatpush3.bf16.msra.mxu0 %v334_v0  ;;  %303 = vmatprep.mubr.msk.bf16.mxu0 %vm368_vm1, %v367_v1 }
   0x3   :  { %v335_v3 = vld [vmem:[%s466_s3] sm:$0xff]   ;;  %v29_v4 = vpack.c.bf16 %v28_v2, %v28_v2  ;;  %315 = vmatprep.mubr.msk.bf16.mxu1 %vm368_vm1, %v367_v1  ;;  %319 = vmatprep.subr.bf16.mxu0 %v367_v1 }
   0x4   :  { %308 = vmatpush3.bf16.msra.mxu1 %v335_v3 }
   0x5   :  { %309 = vmatprep.subr.bf16.mxu1 %v367_v1  ;;  %304 = vmatmul.mubr.msk.bf16.vlgmr.msra.gmra.mrb[0].mxu0 %vm45_vm0, %v29_v4 }
   0x6   :  { %327 = vmatprep.mubr.msk.bf16.mxu0 %vm368_vm1, %v367_v1 }
   0x8   :  { %310 = vmatpush3.bf16.msra.mxu1 %v336_v5 }
   0x9   :  { %12 = vsyncpa [#allocation3], 0  ;;  %311 = vmatprep.subr.bf16.mxu1 %v367_v1  ;;  %v337_v6 = vld [vmem:[%s466_s3 + $0x10] sm:$0xff]   ;;  %v338_v7 = vld [vmem:[%s466_s3 + $0x18] sm:$0xff]   ;;  %vm130_vm2 = vcmask 523264   ;;  %s369_s23 = smov [#allocation2]  }
   0xa   :  { %v339_v8 = vld [vmem:[%s468_s5] sm:$0xff]   ;;  %v340_v9 = vld [vmem:[%s468_s5 + $0x8] sm:$0xff]   ;;  %v341_v18 = vld [vmem:[%s468_s5 + $0x10] sm:$0xff]   ;;  %vm258_vm3 = vcmask 64512  }
   0xb   :  { %320 = vmatpush3.bf16.msra.mxu0 %v339_v8  ;;  %v274_v10 = vld [vmem:[%s465_s2] ss:$0 sm:$0xff]  ;;  %v342_v19 = vld [vmem:[%s468_s5 + $0x18] sm:$0xff]   ;;  %s266_s5 = sshll.u32 %s369_s23, 4  ;;  %s267_s5 = int_to_ptr.vmem [resolvable:$true] %s266_s5 }
   0xc   :  { %312 = vmatpush3.bf16.msra.mxu1 %v337_v6  ;;  %321 = vmatprep.subr.bf16.mxu0 %v367_v1  ;;  %v277_v20 = vld [vmem:[%s467_s4] ss:$0 sm:$0xff]  ;;  %s343_s4 = scalar_lea.vmem %s267_s5, 128  ;;  %p348_p1 = scmp.lt.s32.totalorder %s267_s5, %s267_s5 }
   0xd   :  { %313 = vmatprep.subr.bf16.mxu1 %v367_v1  ;;  %v283_v28 = vld [vmem:[%s469_s6] ss:$0 sm:$0xff]  ;;  %p344_p0 = scmp.ne.s32.totalorder %s267_s5, %s343_s4  ;;  %p349_p2 = scmp.lt.s32.totalorder %s343_s4, %s343_s4 }
   0xf   :  { %322 = vmatpush3.bf16.msra.mxu0 %v340_v9  ;;  %p350_p3 = por %p349_p2, %p348_p1 }
  0x10   :  { %314 = vmatpush3.bf16.msra.mxu1 %v338_v7  ;;  %323 = vmatprep.subr.bf16.mxu0 %v367_v1 }
  0x11   :  { %p351_p4 = pnand %p350_p3, %p344_p0 }
  0x13   :  { %324 = vmatpush3.bf16.msra.mxu0 %v341_v18 }
  0x14   :  { %325 = vmatprep.subr.bf16.mxu0 %v367_v1 }
  0x17   :  { %326 = vmatpush3.bf16.msra.mxu0 %v342_v19 }
  0xd8   :  { %v83_v11 = vpop.f32.mrb[0].mxu0 }
  0xd9   :  { %v84_v12 = vadd.f32 %v274_v10, %v83_v11  ;;  %v305_v13 = vpop.f32.mrb[1].mxu0 }
  0xda   :  { %v86_v14 = vpop.f32.mrb[2].mxu0 }
  0xdb   :  { %v89_v15 = vmax.f32 %v84_v12, 0.0  ;;  %v306_v16 = vpop.f32.mrb[3].mxu0 }
  0xdd   :  { %v90_v17 = vpack.c.bf16 %v89_v15, %v89_v15 }
  0xdf   :  { %316 = vmatmul.mubr.msk.bf16.vlgmr.msra.gmra.mrb[0].mxu1 %vm130_vm2, %v90_v17 }
 0x1b2   :  { %v168_v21 = vpop.f32.mrb[0].mxu1 }
 0x1b3   :  { %v169_v22 = vadd.f32 %v277_v20, %v168_v21  ;;  %v317_v23 = vpop.f32.mrb[1].mxu1 }
 0x1b4   :  { %v171_v24 = vpop.f32.mrb[2].mxu1 }
 0x1b5   :  { %v174_v25 = vmax.f32 %v169_v22, 0.0  ;;  %v318_v26 = vpop.f32.mrb[3].mxu1 }
 0x1b7   :  { %v175_v27 = vpack.c.bf16 %v174_v25, %v174_v25 }
 0x1b9   :  { %328 = vmatmul.mubr.msk.bf16.vlgmr.msra.gmra.mrb[4].mxu0 %vm130_vm2, %v175_v27 }
 0x28c   :  { %v252_v29 = vpop.f32.mrb[4].mxu0 }
 0x28d   :  { %v253_v30 = vadd.f32 %v283_v28, %v252_v29  ;;  %v329_v31 = vpop.f32.mrb[5].mxu0 }
 0x28e   :  { %v255_v32 = vpop.f32.mrb[6].mxu0 }
 0x28f   :  { %v330_v33 = vpop.f32.mrb[7].mxu0  ;;  %259 = vst.msk [vmem:[#allocation2] sm:$0xff] %vm258_vm3, %v253_v30 }
 0x290   :  { %354 = shalt.err (!%p351_p4)
}
 0x291   :  { %s355_s6 = scalar_lea.hbm %s470_s7, 128 }
 0x292   :  { %p356_p5 = scmp.ne.s32.totalorder %s470_s7, %s355_s6  ;;  %p359_p6 = scmp.lt.u32.totalorder %s355_s6, %s470_s7 }
 0x294   :  { %p361_p7 = pnand %p359_p6, %p356_p5 }
 0x296   :  { %364 = shalt.err (!%p361_p7)
}
 0x297   :  { %269 = dma.vmem_to_hbm [thread:$0]  %s267_s5, 128, %s470_s7, [#allocation3]  }
 0x298   :  { %365 = dma.done.wait [#allocation3], 128  }
 0x299   :  { %366 = vsyncadd [#allocation3], 4294967168 }
 0x29a   :  { %273 = vsyncpa [#allocation3], 1 }

</bundles_post_ra>
